<compile_context>
chip_gen: v7x
topology: tpu7x:2x2x1
jax: 0.10.0
libtpu: 0.0.40
codegen_flags: <defaults>
</compile_context>

<pallas_src>
import jax
import jax.numpy as jnp
from jax.experimental import pallas as pl
from jax.experimental.pallas import tpu as pltpu

FEAT = 400      # r3d_18 classifier output dim (Kinetics-400)
HID = 256       # fusion hidden size


def _round_up(x, m):
    return ((x + m - 1) // m) * m


def _choose_tk(F):
    if F <= 2048:
        return 512
    if F <= 8192:
        return 2048
    return 4096     # cap for v7x (64 MiB VMEM / TC); plenty for v5e/v6e too


# ----------------------------- Kernel A: backbone heads -----------------------------

def _heads_kernel(x_ref, w_ref, b_ref, out_ref, acc_ref):
    k = pl.program_id(2)

    @pl.when(k == 0)
    def _():
        acc_ref[...] = jnp.zeros_like(acc_ref)

    # bf16 tiles in, f32 MXU accumulation.
    acc_ref[...] += jnp.dot(x_ref[...], w_ref[...], preferred_element_type=jnp.float32)

    @pl.when(k == pl.num_programs(2) - 1)
    def _():
        out_ref[...] = acc_ref[...] + b_ref[...]


# ----------------------------- Kernel B: fusion MLP ---------------------------------

def _fusion_kernel(heads_ref, w0a_ref, w0b_ref, b0_ref,
                   w1_ref, b1_ref, w2_ref, b2_ref, w3_ref, out_ref):
    f32 = jnp.float32
    x_spa = heads_ref[0]       # (tm, FEAT)
    x_temp = heads_ref[1]      # (tm, FEAT)

    # cat((x_spa, x_temp), 1) @ W0 == x_spa @ W0a + x_temp @ W0b  (concat-free)
    h0 = (jnp.dot(x_spa, w0a_ref[...], preferred_element_type=f32)
          + jnp.dot(x_temp, w0b_ref[...], preferred_element_type=f32)
          + b0_ref[...])
    out0 = jnp.maximum(h0, 0.0)                           # relu; dropout = identity (eval)

    h1 = jnp.dot(out0, w1_ref[...], preferred_element_type=f32) + b1_ref[...]
    out1 = jnp.maximum(h1, 0.0) + out0                    # relu1 + residual

    h2 = jnp.dot(out1, w2_ref[...], preferred_element_type=f32) + b2_ref[...]
    out2 = jnp.maximum(h2, 0.0) + out1                    # relu2 + residual

    out_ref[...] = jnp.dot(out2, w3_ref[...], preferred_element_type=f32)   # li, no bias


# ------------------------------------ wrappers ---------------------------------------

def prepare_params(raw_params):
    """One-time (outside the hot path) cast / pad / stack of the model weights."""
    (ws, bs, wt, bt, w0a, w0b, b0, w1, b1, w2, b2, w3) = raw_params
    F = ws.shape[0]
    n_classes = w3.shape[1]
    tk = _choose_tk(F)
    F_pad = _round_up(F, tk)
    nout_pad = _round_up(n_classes, 128)

    def pad_rows(w):
        return jnp.pad(w.astype(jnp.bfloat16), ((0, F_pad - F), (0, 0)))

    w_both = jnp.stack([pad_rows(ws), pad_rows(wt)])            # (2, F_pad, FEAT) bf16
    b_both = jnp.stack([bs.astype(jnp.float32),
                        bt.astype(jnp.float32)])                # (2, 1, FEAT) f32
    w3_p = jnp.pad(w3.astype(jnp.float32),
                   ((0, 0), (0, nout_pad - n_classes)))         # lane-dense output
    fusion = tuple(a.astype(jnp.float32) for a in (w0a, w0b, b0, w1, b1, w2, b2))

    return dict(F=F, F_pad=F_pad, tk=tk, n_classes=n_classes, nout_pad=nout_pad,
                w_both=w_both, b_both=b_both, fusion=fusion, w3=w3_p)


def mix_model_forward(x_spatial, x_temporal, prepared):
    B = x_spatial.shape[0]
    xs = x_spatial.reshape(B, -1)
    xt = x_temporal.reshape(B, -1)

    F = prepared["F"]
    assert xs.shape[1] == F and xt.shape[1] == F
    F_pad, tk = prepared["F_pad"], prepared["tk"]
    n_classes, nout_pad = prepared["n_classes"], prepared["nout_pad"]

    # Batch tiling: one batch tile whenever possible so the (F, 400) weight streams
    # are DMA'd exactly once; padded rows are zero and get sliced off at the end.
    tm = _round_up(B, 16) if B <= 512 else 256
    B_pad = _round_up(B, tm)
    nb = B_pad // tm
    nk = F_pad // tk

    # Activation prep (stack+cast+pad fuses to one small XLA op; zero padding
    # does not change the math).
    x_both = jnp.pad(jnp.stack([xs, xt]).astype(jnp.bfloat16),
                     ((0, 0), (0, B_pad - B), (0, F_pad - F)))

    # --- Kernel A: backbone heads, grid = (stream, batch, K) ---
    heads = pl.pallas_call(
        _heads_kernel,
        out_shape=jax.ShapeDtypeStruct((2, B_pad, FEAT), jnp.float32),
        grid_spec=pltpu.PrefetchScalarGridSpec(
            num_scalar_prefetch=0,
            grid=(2, nb, nk),
            in_specs=[
                pl.BlockSpec((None, tm, tk), lambda s, i, k: (s, i, k)),
                pl.BlockSpec((None, tk, FEAT), lambda s, i, k: (s, k, 0)),
                pl.BlockSpec((None, 1, FEAT), lambda s, i, k: (s, 0, 0)),
            ],
            out_specs=pl.BlockSpec((None, tm, FEAT), lambda s, i, k: (s, i, 0)),
            scratch_shapes=[pltpu.VMEM((tm, FEAT), jnp.float32)]),
        compiler_params=pltpu.CompilerParams(
            dimension_semantics=("parallel", "parallel", "arbitrary"),
            vmem_limit_bytes=40 * 1024 * 1024),
    )(x_both, prepared["w_both"], prepared["b_both"])

    # --- Kernel B: fusion MLP (tiny; everything VMEM-resident, lane-dense output) ---
    w0a, w0b, b0, w1, b1, w2, b2 = prepared["fusion"]
    w3 = prepared["w3"]

    def const2d(shape):
        return pl.BlockSpec(shape, lambda i: (0, 0))

    out_padded = pl.pallas_call(
        _fusion_kernel,
        out_shape=jax.ShapeDtypeStruct((B_pad, nout_pad), jnp.float32),
        grid=(nb,),
        in_specs=[
            pl.BlockSpec((2, tm, FEAT), lambda i: (0, i, 0)),
            const2d((FEAT, HID)), const2d((FEAT, HID)), const2d((1, HID)),
            const2d((HID, HID)), const2d((1, HID)),
            const2d((HID, HID)), const2d((1, HID)),
            const2d((HID, nout_pad)),
        ],
        out_specs=pl.BlockSpec((tm, nout_pad), lambda i: (i, 0)),
        compiler_params=pltpu.CompilerParams(
            dimension_semantics=("parallel",)),
    )(heads, w0a, w0b, b0, w1, b1, w2, b2, w3)

    return out_padded[:B, :n_classes]


def init_params(key, feat_in, n_classes):
    """Deterministic init (PyTorch-style U(-1/sqrt(fan_in), 1/sqrt(fan_in)))."""
    def lin(key, fan_in, fan_out, bias=True):
        kw, kb = jax.random.split(key)
        bound = 1.0 / jnp.sqrt(jnp.float32(fan_in))
        w = jax.random.uniform(kw, (fan_in, fan_out), jnp.float32, -bound, bound)
        if not bias:
            return w, None
        b = jax.random.uniform(kb, (1, fan_out), jnp.float32, -bound, bound)
        return w, b

    ks = jax.random.split(key, 6)
    ws, bs = lin(ks[0], feat_in, FEAT)              # spatial backbone head
    wt, bt = lin(ks[1], feat_in, FEAT)              # temporal backbone head
    w0, b0 = lin(ks[2], 2 * FEAT, HID)              # fusion.lin  (800 -> 256)
    w1, b1 = lin(ks[3], HID, HID)                   # fusion.lin1
    w2, b2 = lin(ks[4], HID, HID)                   # fusion.lin2
    w3, _ = lin(ks[5], HID, n_classes, bias=False)  # fusion.li (no bias)

    w0a, w0b = w0[:FEAT], w0[FEAT:]                 # split for concat-free matmul
    return (ws, bs, wt, bt, w0a, w0b, b0, w1, b1, w2, b2, w3)


def reference_forward(x_spatial, x_temporal, params):
    """Pure-JAX reference (backbone inputs/weights bf16-quantized to mirror the
    kernel's bf16 weight stream; fusion MLP in f32)."""
    (ws, bs, wt, bt, w0a, w0b, b0, w1, b1, w2, b2, w3) = params
    B = x_spatial.shape[0]
    q = lambda a: a.astype(jnp.bfloat16).astype(jnp.float32)
    xs = q(x_spatial.reshape(B, -1))
    xt = q(x_temporal.reshape(B, -1))
    x_spa = xs @ q(ws) + bs
    x_temp = xt @ q(wt) + bt
    out = jax.nn.relu(x_spa @ w0a + x_temp @ w0b + b0)
    out1 = jax.nn.relu(out @ w1 + b1) + out
    out2 = jax.nn.relu(out1 @ w2 + b2) + out1
    return out2 @ w3


if __name__ == "__main__":
    key = jax.random.PRNGKey(0)
    k_in0, k_in1, k_param = jax.random.split(key, 3)

    B, C, T, H, W = 2, 3, 4, 8, 8          # small NCDHW video shapes (F = 768 -> 2 K tiles)
    n_classes = 10

    x_spatial = jax.random.normal(k_in0, (B, C, T, H, W), jnp.float32)
    x_temporal = jax.random.normal(k_in1, (B, C, T, H, W), jnp.float32)

    params = init_params(k_param, C * T * H * W, n_classes)
    prepared = prepare_params(params)       # one-time cast/pad/stack (outside hot path)

    out = mix_model_forward(x_spatial, x_temporal, prepared)
    out = jax.block_until_ready(out)

    ref = reference_forward(x_spatial, x_temporal, params)
    assert out.shape == (B, n_classes)
    assert jnp.allclose(out, ref, atol=2e-2, rtol=2e-2), "mismatch vs JAX reference"

    print("KERNEL_OK")
</pallas_src>

<mosaic_0001>
module attributes {stable_mosaic.version = 11 : i64} {
  func.func @_heads_kernel(%arg0: i32, %arg1: i32, %arg2: i32, %arg3: memref<1x16x512xbf16, #tpu.memory_space<vmem>>, %arg4: memref<1x512x400xbf16, #tpu.memory_space<vmem>>, %arg5: memref<1x1x400xf32, #tpu.memory_space<vmem>>, %arg6: memref<1x16x400xf32, #tpu.memory_space<vmem>>, %arg7: memref<16x400xf32, #tpu.memory_space<vmem>>) attributes {dimension_semantics = [#tpu.dimension_semantics<parallel>, #tpu.dimension_semantics<parallel>, #tpu.dimension_semantics<arbitrary>], iteration_bounds = array<i64: 2, 1, 2>, scalar_prefetch = 0 : i64, scratch_operands = 1 : i64, tpu.core_type = #tpu.core_type<tc>, window_params = [{transform_indices = @transform_0, window_bounds = array<i64: 1, 16, 512>}, {transform_indices = @transform_1, window_bounds = array<i64: 1, 512, 400>}, {transform_indices = @transform_2, window_bounds = array<i64: 1, 1, 400>}, {transform_indices = @transform_3, window_bounds = array<i64: 1, 16, 400>}]} {
    %c0_i32 = arith.constant 0 : i32
    %0 = arith.cmpi eq, %arg2, %c0_i32 : i32
    %1 = arith.extui %0 : i1 to i32
    %c0_i32_0 = arith.constant 0 : i32
    %2 = arith.cmpi ne, %1, %c0_i32_0 : i32
    scf.if %2 {
      %cst_11 = arith.constant 0.000000e+00 : f32
      %14 = vector.broadcast %cst_11 : f32 to vector<16x400xf32>
      %c0_12 = arith.constant 0 : index
      %c0_13 = arith.constant 0 : index
      %15 = vector.load %arg7[%c0_12, %c0_13] : memref<16x400xf32, #tpu.memory_space<vmem>>, vector<16x400xf32>
      tpu.vector_store %arg7[%c0_12, %c0_13], %14 {strides = array<i32>} : memref<16x400xf32, #tpu.memory_space<vmem>>, vector<16x400xf32>,
    } else {
    }
    %c0 = arith.constant 0 : index
    %c0_1 = arith.constant 0 : index
    %3 = vector.load %arg7[%c0, %c0_1] : memref<16x400xf32, #tpu.memory_space<vmem>>, vector<16x400xf32>
    %c0_2 = arith.constant 0 : index
    %c0_3 = arith.constant 0 : index
    %c0_4 = arith.constant 0 : index
    %4 = vector.load %arg3[%c0_2, %c0_3, %c0_4] : memref<1x16x512xbf16, #tpu.memory_space<vmem>>, vector<1x16x512xbf16>
    %5 = vector.shape_cast %4 : vector<1x16x512xbf16> to vector<16x512xbf16>
    %c0_5 = arith.constant 0 : index
    %c0_6 = arith.constant 0 : index
    %c0_7 = arith.constant 0 : index
    %6 = vector.load %arg4[%c0_5, %c0_6, %c0_7] : memref<1x512x400xbf16, #tpu.memory_space<vmem>>, vector<1x512x400xbf16>
    %7 = vector.shape_cast %6 : vector<1x512x400xbf16> to vector<512x400xbf16>
    %cst = arith.constant dense<0.000000e+00> : vector<16x400xf32>
    %8 = tpu.matmul %5, %7, %cst {dimension_numbers = #tpu.dot_dimension_numbers<[1], [0], [0], [1], [0, 0, 1, 1], [], []>} : vector<16x512xbf16>, vector<512x400xbf16>, vector<16x400xf32> -> vector<16x400xf32>
    %9 = arith.addf %3, %8 : vector<16x400xf32>
    %c0_8 = arith.constant 0 : index
    %c0_9 = arith.constant 0 : index
    %10 = vector.load %arg7[%c0_8, %c0_9] : memref<16x400xf32, #tpu.memory_space<vmem>>, vector<16x400xf32>
    tpu.vector_store %arg7[%c0_8, %c0_9], %9 {strides = array<i32>} : memref<16x400xf32, #tpu.memory_space<vmem>>, vector<16x400xf32>,
    %c1_i32 = arith.constant 1 : i32
    %11 = arith.cmpi eq, %arg2, %c1_i32 : i32
    %12 = arith.extui %11 : i1 to i32
    %c0_i32_10 = arith.constant 0 : i32
    %13 = arith.cmpi ne, %12, %c0_i32_10 : i32
    scf.if %13 {
      %c0_11 = arith.constant 0 : index
      %c0_12 = arith.constant 0 : index
      %14 = vector.load %arg7[%c0_11, %c0_12] : memref<16x400xf32, #tpu.memory_space<vmem>>, vector<16x400xf32>
      %c0_13 = arith.constant 0 : index
      %c0_14 = arith.constant 0 : index
      %c0_15 = arith.constant 0 : index
      %15 = vector.load %arg5[%c0_13, %c0_14, %c0_15] : memref<1x1x400xf32, #tpu.memory_space<vmem>>, vector<1x1x400xf32>
      %16 = vector.shape_cast %15 : vector<1x1x400xf32> to vector<1x400xf32>
      %17 = vector.broadcast %16 : vector<1x400xf32> to vector<16x400xf32>
      %18 = arith.addf %14, %17 : vector<16x400xf32>
      %c0_16 = arith.constant 0 : index
      %c0_17 = arith.constant 0 : index
      %c0_18 = arith.constant 0 : index
      %19 = vector.load %arg6[%c0_16, %c0_17, %c0_18] : memref<1x16x400xf32, #tpu.memory_space<vmem>>, vector<1x16x400xf32>
      %20 = vector.shape_cast %19 : vector<1x16x400xf32> to vector<16x400xf32>
      %21 = vector.shape_cast %18 : vector<16x400xf32> to vector<1x16x400xf32>
      tpu.vector_store %arg6[%c0_16, %c0_17, %c0_18], %21 {strides = array<i32>} : memref<1x16x400xf32, #tpu.memory_space<vmem>>, vector<1x16x400xf32>,
    } else {
    }
    return
  }
  func.func @transform_0(%arg0: i32, %arg1: i32, %arg2: i32) -> (i32, i32, i32) {
    %c0_i32 = arith.constant 0 : i32
    return %arg0, %arg1, %arg2 : i32, i32, i32
  }
  func.func @transform_1(%arg0: i32, %arg1: i32, %arg2: i32) -> (i32, i32, i32) {
    %c0_i32 = arith.constant 0 : i32
    %c0_i32_0 = arith.constant 0 : i32
    return %arg0, %arg2, %c0_i32 : i32, i32, i32
  }
  func.func @transform_2(%arg0: i32, %arg1: i32, %arg2: i32) -> (i32, i32, i32) {
    %c0_i32 = arith.constant 0 : i32
    %c0_i32_0 = arith.constant 0 : i32
    %c0_i32_1 = arith.constant 0 : i32
    return %arg0, %c0_i32, %c0_i32_0 : i32, i32, i32
  }
  func.func @transform_3(%arg0: i32, %arg1: i32, %arg2: i32) -> (i32, i32, i32) {
    %c0_i32 = arith.constant 0 : i32
    %c0_i32_0 = arith.constant 0 : i32
    return %arg0, %arg1, %c0_i32 : i32, i32, i32
  }
}

</mosaic_0001>

<bundles_post_ra>
// kernel: tpu_custom_call.1
= control target key start
LH: loop header
LB: loop body
LE: loop exit
PB: predicated region body
PF: predicated region fallthrough
CT: control target
= control target key end

     0   :  { %s2402_s0 = inlined_call_operand.vmem [shape: bf16[2,16,1024], index: 0, kind: input, shape index: {}]   ;;  %s2403_s1 = inlined_call_operand.vmem [shape: bf16[2,1024,400], index: 1, kind: input, shape index: {}]   ;;  %s2404_s2 = inlined_call_operand.vmem [shape: f32[2,1,400], index: 2, kind: input, shape index: {}]   ;;  %s2405_s3 = inlined_call_operand.hbm [shape: f32[2,16,400], index: 3, kind: output, shape index: {}]  }
   0x1   :  { %2411 = sst [smem:[#allocation11_spill]] %s2402_s0 }
   0x2   :  { %8 = vsyncpa [#allocation5], 0 }
   0x3   :  { %10 = vsyncpa [#allocation5 + $0x1], 0  ;;  %s2064_s12 = smov 0   ;;  %s2066_s13 = smov 0  }
   0x4   :  { %s2068_s14 = smov 0   ;;  %s2070_s15 = smov 0  }
   0x5   :  { %s2072_s16 = smov 0   ;;  %s2074_s17 = smov 0  }
   0x6   :  { %s2076_s18 = smov 0   ;;  %s2078_s19 = smov 0  }
   0x7   :  { %s2080_s20 = smov 0   ;;  %s2082_s21 = smov 0  }
   0x8 LB: > { %2412 = sst [smem:[#allocation7_spill]] %s2030_s19  ;;  %s1476_s22 = sadd.s32 4294967295, %s2038_s21   ;;  %s2038_s21 = sphi %s2082_s21, %s16_s21   ;;  %s2034_s20 = sphi %s2080_s20, %s2424_s20   ;;  %s2030_s19 = sphi %s2078_s19, %s2423_s19   ;;  %s2026_s18 = sphi %s2076_s18, %s2422_s18   ;;  %s2022_s17 = sphi %s2074_s17, %s2421_s17   ;;  %s2018_s16 = sphi %s2072_s16, %s2429_s16   ;;  %s2014_s15 = sphi %s2070_s15, %s2428_s15   ;;  %s2010_s14 = sphi %s2068_s14, %s2427_s14   ;;  %s2006_s13 = sphi %s2066_s13, %s2426_s13   ;;  %s2002_s12 = sphi %s2064_s12, %s2425_s12  }
   0x9   : > { %2413 = sst [smem:[#allocation8_spill]] %s2034_s20  ;;  %s1477_s23 = sadd.s32 4294967294, %s2038_s21  }
   0xa   : > { %s28_s24 = sadd.s32 1, %s2030_s19  ;;  %s35_s25 = sadd.s32 1, %s2034_s20 }
   0xb   : > { %p29_p0 = scmp.ge.s32.totalorder %s28_s24, 2  ;;  %s46_s26 = sadd.s32 1, %s2018_s16 }
   0xc   : > { %p53_p1 = scmp.ne.s32.totalorder %s2018_s16, %s2014_s15  ;;  %p54_p2 = scmp.eq.s32.totalorder %s2038_s21, 0 }
   0xd   : > { %s2431_s24 = smov (%p29_p0, %s28_s24), 0  ;;  %s2433_s25 = smov (!%p29_p0, %s35_s25), %s2034_s20 }
   0xe   : > { %2414 = sst [smem:[#allocation9_spill]] %s2431_s24  ;;  %s42_s27 = ssub.s32 %s2030_s19, %s2431_s24 }
   0xf   : > { %p2127_p3 = por %p54_p2, %p53_p1  ;;  %p37_p4 = scmp.ge.s32.totalorder %s2433_s25, 2 }
  0x10   : > { %s128_s29 = sadd.s32 1, %s2010_s14  ;;  %p138_p5 = scmp.ne.s32.totalorder %s2010_s14, %s2006_s13 }
  0x11   : > { %p139_p6 = scmp.eq.s32.totalorder %s1476_s22, 3  ;;  %s2435_s25 = smov (%p37_p4, %s2433_s25), 0 }
  0x12   : > { %2416 = sst [smem:[#allocation10_spill]] %s2435_s25  ;;  %p144_p8 = scmp.ne.s32.totalorder %s2006_s13, %s2002_s12 }
  0x13   : > { %p2136_p7 = por %p139_p6, %p138_p5  ;;  %s39_s4 = ssub.s32 %s2034_s20, %s2435_s25 }
  0x14   : > { %p145_p9 = scmp.eq.s32.totalorder %s1477_s23, 3  ;;  %s43_s5 = sor.u32 %s42_s27, %s39_s4 }
  0x15   : > { %p126_p10 = scmp.eq.s32.totalorder %s39_s4, 0  ;;  %p44_p11 = scmp.eq.s32.totalorder %s43_s5, 0 }
  0x16   : > { %p2144_p12 = por %p145_p9, %p144_p8  ;;  %p1479_p13 = scmp.ge.s32.totalorder %s2038_s21, 4 }
  0x17   : > { %s2149_s7 = scalar_select %p126_p10, %s2010_s14, %s128_s29  }
  0x18   : > { %s2152_s8 = scalar_select %p44_p11, %s2018_s16, %s46_s26  }
  0x19   : > { %161 = sbr.rel (%p1479_p13) target bundleno = 44 (0x2c), region = 16 }
  0x20   : > { %164 = sbr.rel (!%p2127_p3) target bundleno = 44 (0x2c), region = 20  ;;  %s166_s9 = sand.u32 (%p2127_p3), 1, %s2018_s16  }
  0x21   : > { %s1481_s10 = sshll.u32 (%p2127_p3), %s2030_s19, 2  ;;  %s1480_s11 = sshll.u32 (%p2127_p3), %s166_s9, 5 }
  0x22   : > { %s1482_s22 = sshll.u32 (%p2127_p3), %s2034_s20, 4  ;;  %s2419_s0 = sld [smem:[#allocation11_spill]] (%p2127_p3) }
  0x23   : > { %s174_s23 = sadd.s32 (%p2127_p3), %s1482_s22, %s1481_s10  ;;  %s168_s5 = scalar_lea.vmem (%p2127_p3), [#allocation3], %s1480_s11 }
  0x24   : > { %s1483_s27 = sshll.u32 (%p2127_p3), %s174_s23, 2 }
  0x28   : > { %s176_s26 = scalar_lea.vmem %s2419_s0, %s1483_s27 }
  0x29   : > { %v189_v0 = vld [vmem:[%s176_s26] sm:$0xff]  ;;  %v191_v1 = vld [vmem:[%s176_s26 + $0x8] sm:$0xff] }
  0x2a   : > { %v193_v2 = vld [vmem:[%s176_s26 + $0x20] sm:$0xff]  ;;  %190 = vst [vmem:[%s168_s5] sm:$0xff] %v189_v0  ;;  %192 = vst [vmem:[%s168_s5 + $0x8] sm:$0xff] %v191_v1  ;;  %v195_v3 = vld [vmem:[%s176_s26 + $0x28] sm:$0xff] }
  0x2b   : > { %194 = vst [vmem:[%s168_s5 + $0x10] sm:$0xff] %v193_v2  ;;  %196 = vst [vmem:[%s168_s5 + $0x18] sm:$0xff] %v195_v3 }
  0x2c PF: > { %p1484_p0 = scmp.ge.s32.totalorder %s2038_s21, 1  ;;  %p222_p1 = scmp.lt.s32.totalorder %s2038_s21, 5 }
  0x2e   : > { %p223_p2 = pnand %p1484_p0, %p222_p1 }
  0x2f   : > { %s229_s28 = sand.u32 (!%p223_p2), 1, %s2014_s15   ;;  %s2409_s9 = sand.u32 (!%p223_p2), 1, %s2006_s13  }
  0x30   : > { %226 = sbr.rel (%p223_p2) target bundleno = 446 (0x1be), region = 51  ;;  %s1485_s10 = sshll.u32 (!%p223_p2), %s229_s28, 5 }
  0x31   : > { %s1486_s11 = sshll.u32 (!%p223_p2), %s2409_s9, 6  ;;  %s1487_s22 = sshll.u32 (!%p223_p2), %s2022_s17, 6 }
  0x32   : > { %p269_p3 = scmp.lt.s32.totalorder (!%p223_p2), %s2026_s18, 1  ;;  %p271_p4 = scmp.lt.s32.totalorder (!%p223_p2), %s1487_s22, 127 }
  0x33   : > { %s2182_s9 = scalar_lea.vmem (!%p223_p2), [#allocation3], %s1485_s10  ;;  %s2184_s19 = scalar_lea.vmem (!%p223_p2), [#allocation4], %s1486_s11 }
  0x34   : > { %p1492_p5 = scmp.ne.s32.totalorder (!%p223_p2), %s2022_s17, 0 }
  0x37   : > { %s270_s23 = scalar_select %p269_p3, %s2026_s18, 1 }
  0x38   : > { %s2437_s22 = smov (!%p271_p4, %s1487_s22), 127  ;;  %287 = sbr.rel (%p1492_p5) target bundleno = 63 (0x3f), region = 59 }
  0x39   : > { %s1489_s27 = sshll.u32 %s270_s23, 9  ;;  %s1491_s4 = sshll.u32 %s270_s23, 2  ;;  %vm291_vm0 = vcmask (!%p1492_p5), 130048   ;;  %v2040_v4 = vmov (!%p1492_p5), 0.0  }
  0x3a   : > { %s1488_s29 = sshll.u32 %s2437_s22, 2  ;;  %s2175_s0 = scalar_lea.vmem %s2404_s2, %s1491_s4  ;;  %288 = vst [vmem:[#allocation2] sm:$0xff] (!%p1492_p5), %v2040_v4  ;;  %289 = vst [vmem:[#allocation2 + $0x8] sm:$0xff] (!%p1492_p5), %v2040_v4 }
  0x3b   : > { %s275_s25 = sadd.s32 %s1489_s27, %s1488_s29  ;;  %290 = vst [vmem:[#allocation2 + $0x10] sm:$0xff] (!%p1492_p5), %v2040_v4  ;;  %293 = vst [vmem:[#allocation2 + $0x20] sm:$0xff] (!%p1492_p5), %v2040_v4 }
  0x3c   : > { %s1490_s24 = sshll.u32 %s275_s25, 2  ;;  %294 = vst [vmem:[#allocation2 + $0x28] sm:$0xff] (!%p1492_p5), %v2040_v4  ;;  %295 = vst [vmem:[#allocation2 + $0x30] sm:$0xff] (!%p1492_p5), %v2040_v4 }
  0x3d   : > { %s2180_s28 = scalar_lea.vmem %s2403_s1, %s1490_s24  ;;  %292 = vst.msk [vmem:[#allocation2 + $0x18] sm:$0xff] (!%p1492_p5), %vm291_vm0, %v2040_v4  ;;  %296 = vst.msk [vmem:[#allocation2 + $0x38] sm:$0xff] (!%p1492_p5), %vm291_vm0, %v2040_v4 }
  0x3f PF: > { %v1730_v5 = vld [vmem:[%s2180_s28 + $0x4] ss:$16 sps:$4 sm:$0xff]   ;;  %v1732_v6 = vld [vmem:[%s2180_s28 + $0xc] ss:$16 sps:$4 sm:$0xff]   ;;  %v1734_v7 = vld [vmem:[%s2180_s28] ss:$16 sps:$4 sm:$0xff]  }
  0x40   : > { %1097 = vmatprep.subr.bf16.mxu0 %v1730_v5  ;;  %v1735_v8 = vld [vmem:[%s2180_s28 + $0x8] ss:$16 sps:$4 sm:$0xff]   ;;  %1183 = vmatprep.subr.bf16.mxu1 %v1732_v6  ;;  %v1736_v9 = vld [vmem:[%s2180_s28 + $0x24] ss:$16 sps:$4 sm:$0xff]   ;;  %v1738_v10 = vld [vmem:[%s2180_s28 + $0x2c] ss:$16 sps:$4 sm:$0xff]  }
  0x41   : > { %1098 = vmatpush1.bf16.msra.mxu0 %v1734_v7  ;;  %1184 = vmatpush1.bf16.msra.mxu1 %v1735_v8  ;;  %v1740_v11 = vld [vmem:[%s2180_s28 + $0x20] ss:$16 sps:$4 sm:$0xff]   ;;  %v1741_v12 = vld [vmem:[%s2180_s28 + $0x28] ss:$16 sps:$4 sm:$0xff]   ;;  %v1742_v13 = vld [vmem:[%s2180_s28 + $0x44] ss:$16 sps:$4 sm:$0xff]  }
  0x42   : > { %1099 = vmatprep.subr.bf16.mxu0 %v1736_v9  ;;  %1185 = vmatprep.subr.bf16.mxu1 %v1738_v10  ;;  %v1744_v14 = vld [vmem:[%s2180_s28 + $0x4c] ss:$16 sps:$4 sm:$0xff]   ;;  %v1746_v15 = vld [vmem:[%s2180_s28 + $0x40] ss:$16 sps:$4 sm:$0xff]   ;;  %v1747_v16 = vld [vmem:[%s2180_s28 + $0x48] ss:$16 sps:$4 sm:$0xff]  }
  0x43   : > { %v1748_v17 = vld [vmem:[%s2180_s28 + $0x64] ss:$16 sps:$4 sm:$0xff]   ;;  %v1750_v18 = vld [vmem:[%s2180_s28 + $0x6c] ss:$16 sps:$4 sm:$0xff]   ;;  %v1752_v19 = vld [vmem:[%s2180_s28 + $0x60] ss:$16 sps:$4 sm:$0xff]  }
  0x44   : > { %v1753_v20 = vld [vmem:[%s2180_s28 + $0x68] ss:$16 sps:$4 sm:$0xff]   ;;  %v1754_v21 = vld [vmem:[%s2180_s28 + $0x84] ss:$16 sps:$4 sm:$0xff]   ;;  %v1756_v22 = vld [vmem:[%s2180_s28 + $0x8c] ss:$16 sps:$4 sm:$0xff]  }
  0x45   : > { %1100 = vmatpush1.bf16.msra.mxu0 %v1740_v11  ;;  %1186 = vmatpush1.bf16.msra.mxu1 %v1741_v12  ;;  %v1758_v23 = vld [vmem:[%s2180_s28 + $0x80] ss:$16 sps:$4 sm:$0xff]   ;;  %v1759_v24 = vld [vmem:[%s2180_s28 + $0x88] ss:$16 sps:$4 sm:$0xff]   ;;  %v1760_v25 = vld [vmem:[%s2180_s28 + $0xa4] ss:$16 sps:$4 sm:$0xff]  }
  0x46   : > { %1101 = vmatprep.subr.bf16.mxu0 %v1742_v13  ;;  %1187 = vmatprep.subr.bf16.mxu1 %v1744_v14  ;;  %v1762_v26 = vld [vmem:[%s2180_s28 + $0xac] ss:$16 sps:$4 sm:$0xff]   ;;  %v1764_v27 = vld [vmem:[%s2180_s28 + $0xa0] ss:$16 sps:$4 sm:$0xff]   ;;  %v1765_v28 = vld [vmem:[%s2180_s28 + $0xa8] ss:$16 sps:$4 sm:$0xff]  }
  0x47   : > { %v1766_v29 = vld [vmem:[%s2180_s28 + $0xc4] ss:$16 sps:$4 sm:$0xff]   ;;  %v1768_v30 = vld [vmem:[%s2180_s28 + $0xcc] ss:$16 sps:$4 sm:$0xff]   ;;  %v1770_v31 = vld [vmem:[%s2180_s28 + $0xc0] ss:$16 sps:$4 sm:$0xff]  }
  0x48   : > { %v1771_v32 = vld [vmem:[%s2180_s28 + $0xc8] ss:$16 sps:$4 sm:$0xff]   ;;  %v1772_v33 = vld [vmem:[%s2180_s28 + $0xe4] ss:$16 sps:$4 sm:$0xff]   ;;  %v1774_v34 = vld [vmem:[%s2180_s28 + $0xec] ss:$16 sps:$4 sm:$0xff]  }
  0x49   : > { %1102 = vmatpush1.bf16.msra.mxu0 %v1746_v15  ;;  %1188 = vmatpush1.bf16.msra.mxu1 %v1747_v16  ;;  %v1776_v35 = vld [vmem:[%s2180_s28 + $0xe0] ss:$16 sps:$4 sm:$0xff]   ;;  %v1777_v36 = vld [vmem:[%s2180_s28 + $0xe8] ss:$16 sps:$4 sm:$0xff]   ;;  %v1778_v37 = vld [vmem:[%s2180_s28 + $0x104] ss:$16 sps:$4 sm:$0xff]  }
  0x4a   : > { %1103 = vmatprep.subr.bf16.mxu0 %v1748_v17  ;;  %1189 = vmatprep.subr.bf16.mxu1 %v1750_v18  ;;  %v1780_v38 = vld [vmem:[%s2180_s28 + $0x10c] ss:$16 sps:$4 sm:$0xff]   ;;  %v1782_v39 = vld [vmem:[%s2180_s28 + $0x100] ss:$16 sps:$4 sm:$0xff]   ;;  %v1783_v40 = vld [vmem:[%s2180_s28 + $0x108] ss:$16 sps:$4 sm:$0xff]  }
  0x4b   : > { %v1784_v41 = vld [vmem:[%s2180_s28 + $0x124] ss:$16 sps:$4 sm:$0xff]   ;;  %v1786_v42 = vld [vmem:[%s2180_s28 + $0x12c] ss:$16 sps:$4 sm:$0xff]   ;;  %v1788_v43 = vld [vmem:[%s2180_s28 + $0x120] ss:$16 sps:$4 sm:$0xff]  }
  0x4c   : > { %v1789_v44 = vld [vmem:[%s2180_s28 + $0x128] ss:$16 sps:$4 sm:$0xff]   ;;  %v1790_v45 = vld [vmem:[%s2180_s28 + $0x144] ss:$16 sps:$4 sm:$0xff]   ;;  %v1792_v46 = vld [vmem:[%s2180_s28 + $0x14c] ss:$16 sps:$4 sm:$0xff]  }
  0x4d   : > { %1104 = vmatpush1.bf16.msra.mxu0 %v1752_v19  ;;  %1190 = vmatpush1.bf16.msra.mxu1 %v1753_v20  ;;  %v1794_v47 = vld [vmem:[%s2180_s28 + $0x140] ss:$16 sps:$4 sm:$0xff]   ;;  %v1795_v48 = vld [vmem:[%s2180_s28 + $0x148] ss:$16 sps:$4 sm:$0xff]   ;;  %v1796_v49 = vld [vmem:[%s2180_s28 + $0x164] ss:$16 sps:$4 sm:$0xff]  }
  0x4e   : > { %1105 = vmatprep.subr.bf16.mxu0 %v1754_v21  ;;  %1191 = vmatprep.subr.bf16.mxu1 %v1756_v22  ;;  %v1798_v50 = vld [vmem:[%s2180_s28 + $0x16c] ss:$16 sps:$4 sm:$0xff]   ;;  %v1800_v51 = vld [vmem:[%s2180_s28 + $0x160] ss:$16 sps:$4 sm:$0xff]   ;;  %v1801_v52 = vld [vmem:[%s2180_s28 + $0x168] ss:$16 sps:$4 sm:$0xff]  }
  0x4f   : > { %v1828_v53 = vld [vmem:[%s2182_s9 + $0x4] ss:$16 sps:$4 sm:$0xff]   ;;  %v1804_v55 = vld [vmem:[%s2180_s28 + $0x18c] ss:$16 sps:$4 sm:$0xff]   ;;  %v1806_v56 = vld [vmem:[%s2180_s28 + $0x180] ss:$16 sps:$4 sm:$0xff]  }
  0x50   : > { %v1802_v54 = vld [vmem:[%s2180_s28 + $0x184] ss:$16 sps:$4 sm:$0xff]   ;;  %1129 = vmatprep.mubr.bf16.mxu0 %v1828_v53  ;;  %1215 = vmatprep.mubr.bf16.mxu1 %v1828_v53  ;;  %v1807_v57 = vld [vmem:[%s2180_s28 + $0x188] ss:$16 sps:$4 sm:$0xff]   ;;  %v1810_v59 = vld [vmem:[%s2180_s28 + $0x1ac] ss:$16 sps:$4 sm:$0xff]  }
  0x51   : > { %1106 = vmatpush1.bf16.msra.mxu0 %v1758_v23  ;;  %1192 = vmatpush1.bf16.msra.mxu1 %v1759_v24  ;;  %v1808_v58 = vld [vmem:[%s2180_s28 + $0x1a4] ss:$16 sps:$4 sm:$0xff]   ;;  %v1812_v60 = vld [vmem:[%s2180_s28 + $0x1a0] ss:$16 sps:$4 sm:$0xff]   ;;  %v1813_v61 = vld [vmem:[%s2180_s28 + $0x1a8] ss:$16 sps:$4 sm:$0xff]  }
  0x52   : > { %1107 = vmatprep.subr.bf16.mxu0 %v1760_v25  ;;  %1193 = vmatprep.subr.bf16.mxu1 %v1762_v26  ;;  %v1814_v62 = vld [vmem:[%s2180_s28 + $0x1c4] ss:$16 sps:$4 sm:$0xff]   ;;  %v1816_v63 = vld [vmem:[%s2180_s28 + $0x1cc] ss:$16 sps:$4 sm:$0xff]   ;;  %v1818_v0 = vld [vmem:[%s2180_s28 + $0x1c0] ss:$16 sps:$4 sm:$0xff]  }
  0x53   : > { %v1819_v1 = vld [vmem:[%s2180_s28 + $0x1c8] ss:$16 sps:$4 sm:$0xff]   ;;  %v1820_v2 = vld [vmem:[%s2180_s28 + $0x1e4] ss:$16 sps:$4 sm:$0xff]   ;;  %v1822_v3 = vld [vmem:[%s2180_s28 + $0x1ec] ss:$16 sps:$4 sm:$0xff]  }
  0x54   : > { %v1824_v4 = vld [vmem:[%s2180_s28 + $0x1e0] ss:$16 sps:$4 sm:$0xff]   ;;  %v1825_v5 = vld [vmem:[%s2180_s28 + $0x1e8] ss:$16 sps:$4 sm:$0xff]   ;;  %v1831_v6 = vld [vmem:[%s2180_s28 + $0x204] ss:$16 sps:$4 sm:$0xff]  }
  0x55   : > { %1108 = vmatpush1.bf16.msra.mxu0 %v1764_v27  ;;  %1194 = vmatpush1.bf16.msra.mxu1 %v1765_v28  ;;  %v1834_v7 = vld [vmem:[%s2180_s28 + $0x20c] ss:$16 sps:$4 sm:$0xff]   ;;  %v1826_v8 = vld [vmem:[%s2182_s9] ss:$16 sps:$4 sm:$0xff]   ;;  %v1832_v10 = vld [vmem:[%s2180_s28 + $0x208] ss:$16 sps:$4 sm:$0xff]  }
  0x56   : > { %1109 = vmatprep.subr.bf16.mxu0 %v1766_v29  ;;  %1195 = vmatprep.subr.bf16.mxu1 %v1768_v30  ;;  %v1829_v9 = vld [vmem:[%s2180_s28 + $0x200] ss:$16 sps:$4 sm:$0xff]   ;;  %v1837_v11 = vld [vmem:[%s2180_s28 + $0x224] ss:$16 sps:$4 sm:$0xff]   ;;  %v1840_v12 = vld [vmem:[%s2180_s28 + $0x22c] ss:$16 sps:$4 sm:$0xff]  }
  0x57   : > { %v1835_v13 = vld [vmem:[%s2180_s28 + $0x220] ss:$16 sps:$4 sm:$0xff]   ;;  %v1838_v14 = vld [vmem:[%s2180_s28 + $0x228] ss:$16 sps:$4 sm:$0xff]   ;;  %v1843_v15 = vld [vmem:[%s2180_s28 + $0x244] ss:$16 sps:$4 sm:$0xff]  }
  0x58   : > { %v1846_v16 = vld [vmem:[%s2180_s28 + $0x24c] ss:$16 sps:$4 sm:$0xff]   ;;  %v1841_v17 = vld [vmem:[%s2180_s28 + $0x240] ss:$16 sps:$4 sm:$0xff]   ;;  %v1844_v18 = vld [vmem:[%s2180_s28 + $0x248] ss:$16 sps:$4 sm:$0xff]  }
  0x59   : > { %1110 = vmatpush1.bf16.msra.mxu0 %v1770_v31  ;;  %1196 = vmatpush1.bf16.msra.mxu1 %v1771_v32  ;;  %v1849_v19 = vld [vmem:[%s2180_s28 + $0x264] ss:$16 sps:$4 sm:$0xff]   ;;  %v1852_v20 = vld [vmem:[%s2180_s28 + $0x26c] ss:$16 sps:$4 sm:$0xff]   ;;  %v1847_v21 = vld [vmem:[%s2180_s28 + $0x260] ss:$16 sps:$4 sm:$0xff]  }
  0x5a   : > { %1111 = vmatprep.subr.bf16.mxu0 %v1772_v33  ;;  %1197 = vmatprep.subr.bf16.mxu1 %v1774_v34  ;;  %v1850_v22 = vld [vmem:[%s2180_s28 + $0x268] ss:$16 sps:$4 sm:$0xff]   ;;  %v1855_v23 = vld [vmem:[%s2180_s28 + $0x284] ss:$16 sps:$4 sm:$0xff]   ;;  %v1858_v24 = vld [vmem:[%s2180_s28 + $0x28c] ss:$16 sps:$4 sm:$0xff]  }
  0x5b   : > { %v1853_v25 = vld [vmem:[%s2180_s28 + $0x280] ss:$16 sps:$4 sm:$0xff]   ;;  %v1856_v26 = vld [vmem:[%s2180_s28 + $0x288] ss:$16 sps:$4 sm:$0xff]   ;;  %v1861_v27 = vld [vmem:[%s2180_s28 + $0x2a4] ss:$16 sps:$4 sm:$0xff]  }
  0x5c   : > { %v1864_v28 = vld [vmem:[%s2180_s28 + $0x2ac] ss:$16 sps:$4 sm:$0xff]   ;;  %v1859_v29 = vld [vmem:[%s2180_s28 + $0x2a0] ss:$16 sps:$4 sm:$0xff]   ;;  %v1862_v30 = vld [vmem:[%s2180_s28 + $0x2a8] ss:$16 sps:$4 sm:$0xff]  }
  0x5d   : > { %1112 = vmatpush1.bf16.msra.mxu0 %v1776_v35  ;;  %1198 = vmatpush1.bf16.msra.mxu1 %v1777_v36  ;;  %v1867_v31 = vld [vmem:[%s2180_s28 + $0x2c4] ss:$16 sps:$4 sm:$0xff]   ;;  %v1870_v32 = vld [vmem:[%s2180_s28 + $0x2cc] ss:$16 sps:$4 sm:$0xff]   ;;  %v1865_v34 = vld [vmem:[%s2180_s28 + $0x2c0] ss:$16 sps:$4 sm:$0xff]  }
  0x5e   : > { %1113 = vmatprep.subr.bf16.mxu0 %v1778_v37  ;;  %1199 = vmatprep.subr.bf16.mxu1 %v1780_v38  ;;  %v1927_v33 = vld [vmem:[%s2182_s9 + $0xc] ss:$16 sps:$4 sm:$0xff]   ;;  %v1868_v35 = vld [vmem:[%s2180_s28 + $0x2c8] ss:$16 sps:$4 sm:$0xff]   ;;  %v1873_v36 = vld [vmem:[%s2180_s28 + $0x2e4] ss:$16 sps:$4 sm:$0xff]  }
  0x5f   : > { %v1876_v37 = vld [vmem:[%s2180_s28 + $0x2ec] ss:$16 sps:$4 sm:$0xff]   ;;  %v1871_v38 = vld [vmem:[%s2180_s28 + $0x2e0] ss:$16 sps:$4 sm:$0xff]   ;;  %vm1280_vm1 = vcmask 130048   ;;  %p1625_p6 = scmp.ne.s32.totalorder %s2022_s17, 1 }
  0x60   : > { %v1900_v53 = vld [vmem:[%s2180_s28 + $0x36c] ss:$16 sps:$4 sm:$0xff]  }
  0x61   : > { %1114 = vmatpush1.bf16.msra.mxu0 %v1782_v39  ;;  %1200 = vmatpush1.bf16.msra.mxu1 %v1783_v40  ;;  %v1874_v39 = vld [vmem:[%s2180_s28 + $0x2e8] ss:$16 sps:$4 sm:$0xff]   ;;  %v1879_v40 = vld [vmem:[%s2180_s28 + $0x304] ss:$16 sps:$4 sm:$0xff]  }
  0x62   : > { %1115 = vmatprep.subr.bf16.mxu0 %v1784_v41  ;;  %1201 = vmatprep.subr.bf16.mxu1 %v1786_v42  ;;  %v1882_v41 = vld [vmem:[%s2180_s28 + $0x30c] ss:$16 sps:$4 sm:$0xff]   ;;  %v1877_v42 = vld [vmem:[%s2180_s28 + $0x300] ss:$16 sps:$4 sm:$0xff]  }
  0x65   : > { %1116 = vmatpush1.bf16.msra.mxu0 %v1788_v43  ;;  %1202 = vmatpush1.bf16.msra.mxu1 %v1789_v44  ;;  %v1880_v43 = vld [vmem:[%s2180_s28 + $0x308] ss:$16 sps:$4 sm:$0xff]   ;;  %v1885_v44 = vld [vmem:[%s2180_s28 + $0x324] ss:$16 sps:$4 sm:$0xff]  }
  0x66   : > { %1117 = vmatprep.subr.bf16.mxu0 %v1790_v45  ;;  %1203 = vmatprep.subr.bf16.mxu1 %v1792_v46  ;;  %v1888_v45 = vld [vmem:[%s2180_s28 + $0x32c] ss:$16 sps:$4 sm:$0xff]   ;;  %v1883_v46 = vld [vmem:[%s2180_s28 + $0x320] ss:$16 sps:$4 sm:$0xff]  }
  0x69   : > { %1118 = vmatpush1.bf16.msra.mxu0 %v1794_v47  ;;  %1204 = vmatpush1.bf16.msra.mxu1 %v1795_v48  ;;  %v1886_v47 = vld [vmem:[%s2180_s28 + $0x328] ss:$16 sps:$4 sm:$0xff]   ;;  %v1891_v48 = vld [vmem:[%s2180_s28 + $0x344] ss:$16 sps:$4 sm:$0xff]  }
  0x6a   : > { %1119 = vmatprep.subr.bf16.mxu0 %v1796_v49  ;;  %1205 = vmatprep.subr.bf16.mxu1 %v1798_v50  ;;  %v1894_v49 = vld [vmem:[%s2180_s28 + $0x34c] ss:$16 sps:$4 sm:$0xff]   ;;  %v1889_v50 = vld [vmem:[%s2180_s28 + $0x340] ss:$16 sps:$4 sm:$0xff]  }
  0x6d   : > { %1120 = vmatpush1.bf16.msra.mxu0 %v1800_v51  ;;  %1206 = vmatpush1.bf16.msra.mxu1 %v1801_v52  ;;  %v1892_v51 = vld [vmem:[%s2180_s28 + $0x348] ss:$16 sps:$4 sm:$0xff]   ;;  %v1897_v52 = vld [vmem:[%s2180_s28 + $0x364] ss:$16 sps:$4 sm:$0xff]  }
  0x6e   : > { %1121 = vmatprep.subr.bf16.mxu0 %v1802_v54  ;;  %1207 = vmatprep.subr.bf16.mxu1 %v1804_v55  ;;  %v1895_v54 = vld [vmem:[%s2180_s28 + $0x360] ss:$16 sps:$4 sm:$0xff]   ;;  %v1898_v55 = vld [vmem:[%s2180_s28 + $0x368] ss:$16 sps:$4 sm:$0xff]  }
  0x71   : > { %1122 = vmatpush1.bf16.msra.mxu0 %v1806_v56  ;;  %1208 = vmatpush1.bf16.msra.mxu1 %v1807_v57  ;;  %v1903_v56 = vld [vmem:[%s2180_s28 + $0x384] ss:$16 sps:$4 sm:$0xff]   ;;  %v1906_v57 = vld [vmem:[%s2180_s28 + $0x38c] ss:$16 sps:$4 sm:$0xff]  }
  0x72   : > { %1123 = vmatprep.subr.bf16.mxu0 %v1808_v58  ;;  %1209 = vmatprep.subr.bf16.mxu1 %v1810_v59  ;;  %v1901_v58 = vld [vmem:[%s2180_s28 + $0x380] ss:$16 sps:$4 sm:$0xff]   ;;  %v1904_v59 = vld [vmem:[%s2180_s28 + $0x388] ss:$16 sps:$4 sm:$0xff]  }
  0x75   : > { %1124 = vmatpush1.bf16.msra.mxu0 %v1812_v60  ;;  %1210 = vmatpush1.bf16.msra.mxu1 %v1813_v61  ;;  %v1909_v60 = vld [vmem:[%s2180_s28 + $0x3a4] ss:$16 sps:$4 sm:$0xff]   ;;  %v1912_v61 = vld [vmem:[%s2180_s28 + $0x3ac] ss:$16 sps:$4 sm:$0xff]  }
  0x76   : > { %1125 = vmatprep.subr.bf16.mxu0 %v1814_v62  ;;  %1211 = vmatprep.subr.bf16.mxu1 %v1816_v63  ;;  %v1907_v62 = vld [vmem:[%s2180_s28 + $0x3a0] ss:$16 sps:$4 sm:$0xff]   ;;  %v1910_v63 = vld [vmem:[%s2180_s28 + $0x3a8] ss:$16 sps:$4 sm:$0xff]  }
  0x79   : > { %1126 = vmatpush1.bf16.msra.mxu0 %v1818_v0  ;;  %1212 = vmatpush1.bf16.msra.mxu1 %v1819_v1  ;;  %v1915_v0 = vld [vmem:[%s2180_s28 + $0x3c4] ss:$16 sps:$4 sm:$0xff]   ;;  %v1918_v1 = vld [vmem:[%s2180_s28 + $0x3cc] ss:$16 sps:$4 sm:$0xff]  }
  0x7a   : > { %1127 = vmatprep.subr.bf16.mxu0 %v1820_v2  ;;  %1213 = vmatprep.subr.bf16.mxu1 %v1822_v3  ;;  %v1913_v2 = vld [vmem:[%s2180_s28 + $0x3c0] ss:$16 sps:$4 sm:$0xff]   ;;  %v1916_v3 = vld [vmem:[%s2180_s28 + $0x3c8] ss:$16 sps:$4 sm:$0xff]  }
  0x7d   : > { %1128 = vmatpush1.bf16.msra.mxu0 %v1824_v4  ;;  %1214 = vmatpush1.bf16.msra.mxu1 %v1825_v5  ;;  %v1921_v4 = vld [vmem:[%s2180_s28 + $0x3e4] ss:$16 sps:$4 sm:$0xff]   ;;  %v1924_v5 = vld [vmem:[%s2180_s28 + $0x3ec] ss:$16 sps:$4 sm:$0xff]  }
  0x7e   : > { %1140 = vmatprep.subr.bf16.mxu0 %v1831_v6  ;;  %1226 = vmatprep.subr.bf16.mxu1 %v1834_v7  ;;  %v1919_v6 = vld [vmem:[%s2180_s28 + $0x3e0] ss:$16 sps:$4 sm:$0xff]   ;;  %v1922_v7 = vld [vmem:[%s2180_s28 + $0x3e8] ss:$16 sps:$4 sm:$0xff]  }
  0x80   : > { %1130 = vmatmul.mubr.bf16.vlgmr.msra.gmra.mrb[0].mxu0 %v1826_v8  ;;  %1216 = vmatmul.mubr.bf16.vlgmr.msra.gmra.mrb[0].mxu1 %v1826_v8  ;;  %v1925_v8 = vld [vmem:[%s2182_s9 + $0x8] ss:$16 sps:$4 sm:$0xff]  }
  0x81   : > { %1141 = vmatpush1.bf16.msra.mxu0 %v1829_v9  ;;  %1227 = vmatpush1.bf16.msra.mxu1 %v1832_v10  ;;  %v297_v9 = vld [vmem:[#allocation2] sm:$0xff]  ;;  %v299_v10 = vld [vmem:[#allocation2 + $0x10] sm:$0xff] }
  0x82   : > { %1142 = vmatprep.subr.bf16.mxu0 %v1837_v11  ;;  %1228 = vmatprep.subr.bf16.mxu1 %v1840_v12  ;;  %v298_v11 = vld [vmem:[#allocation2 + $0x8] sm:$0xff]  ;;  %v300_v12 = vld [vmem:[#allocation2 + $0x18] sm:$0xff] }
  0x83   : > { %1172 = vmatprep.mubr.bf16.mxu0 %v1927_v33  ;;  %1258 = vmatprep.mubr.bf16.mxu1 %v1927_v33  ;;  %v1300_v33 = vlaneseq (!%p1625_p6) }
  0x85   : > { %1143 = vmatpush1.bf16.msra.mxu0 %v1835_v13  ;;  %1229 = vmatpush1.bf16.msra.mxu1 %v1838_v14 }
  0x86   : > { %1144 = vmatprep.subr.bf16.mxu0 %v1843_v15  ;;  %1230 = vmatprep.subr.bf16.mxu1 %v1846_v16  ;;  %v301_v15 = vld [vmem:[#allocation2 + $0x20] sm:$0xff]  ;;  %v303_v16 = vld [vmem:[#allocation2 + $0x30] sm:$0xff] }
  0x89   : > { %1145 = vmatpush1.bf16.msra.mxu0 %v1841_v17  ;;  %1231 = vmatpush1.bf16.msra.mxu1 %v1844_v18 }
  0x8a   : > { %1146 = vmatprep.subr.bf16.mxu0 %v1849_v19  ;;  %1232 = vmatprep.subr.bf16.mxu1 %v1852_v20 }
  0x8d   : > { %1147 = vmatpush1.bf16.msra.mxu0 %v1847_v21  ;;  %1233 = vmatpush1.bf16.msra.mxu1 %v1850_v22  ;;  %v302_v21 = vld [vmem:[#allocation2 + $0x28] sm:$0xff]  ;;  %v304_v22 = vld [vmem:[#allocation2 + $0x38] sm:$0xff] }
  0x8e   : > { %1148 = vmatprep.subr.bf16.mxu0 %v1855_v23  ;;  %1234 = vmatprep.subr.bf16.mxu1 %v1858_v24 }
  0x91   : > { %1149 = vmatpush1.bf16.msra.mxu0 %v1853_v25  ;;  %1235 = vmatpush1.bf16.msra.mxu1 %v1856_v26 }
  0x92   : > { %1150 = vmatprep.subr.bf16.mxu0 %v1861_v27  ;;  %1236 = vmatprep.subr.bf16.mxu1 %v1864_v28 }
  0x95   : > { %1151 = vmatpush1.bf16.msra.mxu0 %v1859_v29  ;;  %1237 = vmatpush1.bf16.msra.mxu1 %v1862_v30 }
  0x96   : > { %1152 = vmatprep.subr.bf16.mxu0 %v1867_v31  ;;  %1238 = vmatprep.subr.bf16.mxu1 %v1870_v32 }
  0x99   : > { %1153 = vmatpush1.bf16.msra.mxu0 %v1865_v34  ;;  %1239 = vmatpush1.bf16.msra.mxu1 %v1868_v35  ;;  %v1301_v34 = vshrl.u32 (!%p1625_p6), %v1300_v33, 7  ;;  %v1298_v35 = vld [vmem:[%s2175_s0] sm:$0xf] (!%p1625_p6) }
  0x9a   : > { %1154 = vmatprep.subr.bf16.mxu0 %v1873_v36  ;;  %1240 = vmatprep.subr.bf16.mxu1 %v1876_v37 }
  0x9b   : > { %v1302_v37 = vsub.s32 (!%p1625_p6), 0, %v1301_v34 }
  0x9d   : > { %1155 = vmatpush1.bf16.msra.mxu0 %v1871_v38  ;;  %1241 = vmatpush1.bf16.msra.mxu1 %v1874_v39  ;;  %v1306_v39 = vsub.s32 (!%p1625_p6), 1, %v1301_v34 }
  0x9e   : > { %1156 = vmatprep.subr.bf16.mxu0 %v1879_v40  ;;  %1242 = vmatprep.subr.bf16.mxu1 %v1882_v41  ;;  %v1310_v40 = vsub.s32 (!%p1625_p6), 2, %v1301_v34  ;;  %v1314_v41 = vsub.s32 (!%p1625_p6), 3, %v1301_v34 }
  0xa1   : > { %1157 = vmatpush1.bf16.msra.mxu0 %v1877_v42  ;;  %1243 = vmatpush1.bf16.msra.mxu1 %v1880_v43 }
  0xa2   : > { %1158 = vmatprep.subr.bf16.mxu0 %v1885_v44  ;;  %1244 = vmatprep.subr.bf16.mxu1 %v1888_v45  ;;  %v1303_v45 = vrot.slane (!%p1625_p6), %v1298_v35, %v1302_v37 }
  0xa5   : > { %1159 = vmatpush1.bf16.msra.mxu0 %v1883_v46  ;;  %1245 = vmatpush1.bf16.msra.mxu1 %v1886_v47  ;;  %v1307_v46 = vrot.slane (!%p1625_p6), %v1298_v35, %v1306_v39  ;;  %v1311_v47 = vrot.slane (!%p1625_p6), %v1298_v35, %v1310_v40 }
  0xa6   : > { %1160 = vmatprep.subr.bf16.mxu0 %v1891_v48  ;;  %1246 = vmatprep.subr.bf16.mxu1 %v1894_v49  ;;  %v1315_v48 = vrot.slane (!%p1625_p6), %v1298_v35, %v1314_v41 }
  0xa9   : > { %1161 = vmatpush1.bf16.msra.mxu0 %v1889_v50  ;;  %1247 = vmatpush1.bf16.msra.mxu1 %v1892_v51 }
  0xaa   : > { %1162 = vmatprep.subr.bf16.mxu0 %v1897_v52  ;;  %1248 = vmatprep.subr.bf16.mxu1 %v1900_v53 }
  0xad   : > { %1163 = vmatpush1.bf16.msra.mxu0 %v1895_v54  ;;  %1249 = vmatpush1.bf16.msra.mxu1 %v1898_v55 }
  0xae   : > { %1164 = vmatprep.subr.bf16.mxu0 %v1903_v56  ;;  %1250 = vmatprep.subr.bf16.mxu1 %v1906_v57 }
  0xb1   : > { %1165 = vmatpush1.bf16.msra.mxu0 %v1901_v58  ;;  %1251 = vmatpush1.bf16.msra.mxu1 %v1904_v59 }
  0xb2   : > { %1166 = vmatprep.subr.bf16.mxu0 %v1909_v60  ;;  %1252 = vmatprep.subr.bf16.mxu1 %v1912_v61 }
  0xb5   : > { %1167 = vmatpush1.bf16.msra.mxu0 %v1907_v62  ;;  %1253 = vmatpush1.bf16.msra.mxu1 %v1910_v63 }
  0xb6   : > { %1168 = vmatprep.subr.bf16.mxu0 %v1915_v0  ;;  %1254 = vmatprep.subr.bf16.mxu1 %v1918_v1 }
  0xb9   : > { %1169 = vmatpush1.bf16.msra.mxu0 %v1913_v2  ;;  %1255 = vmatpush1.bf16.msra.mxu1 %v1916_v3 }
  0xba   : > { %1170 = vmatprep.subr.bf16.mxu0 %v1921_v4  ;;  %1256 = vmatprep.subr.bf16.mxu1 %v1924_v5 }
  0xbd   : > { %1171 = vmatpush1.bf16.msra.mxu0 %v1919_v6  ;;  %1257 = vmatpush1.bf16.msra.mxu1 %v1922_v7 }
  0xc0   : > { %1173 = vmatmul.mubr.bf16.vlgmr.msra.gmra.mrb[0].mxu0 %v1925_v8  ;;  %1259 = vmatmul.mubr.bf16.vlgmr.msra.gmra.mrb[0].mxu1 %v1925_v8 }
 0x193   : > { %v1174_v13 = vpop.f32.mrb[0].mxu0  ;;  %v1260_v14 = vpop.f32.mrb[0].mxu1  ;;  %1289 = sbr.rel (%p1625_p6) target bundleno = 420 (0x1a4), region = 63 }
 0x194   : > { %v1269_v17 = vadd.f32 %v1174_v13, %v297_v9  ;;  %v1271_v18 = vadd.f32 %v1260_v14, %v299_v10  ;;  %v1176_v19 = vpop.f32.mrb[1].mxu0  ;;  %v1262_v20 = vpop.f32.mrb[1].mxu1 }
 0x195   : > { %v1270_v23 = vadd.f32 %v1176_v19, %v298_v11  ;;  %v1272_v24 = vadd.f32 %v1262_v20, %v300_v12  ;;  %v1178_v25 = vpop.f32.mrb[2].mxu0  ;;  %v1264_v26 = vpop.f32.mrb[2].mxu1 }
 0x196   : > { %1277 = vst [vmem:[#allocation2] sm:$0xff] %v1269_v17  ;;  %1279 = vst [vmem:[#allocation2 + $0x10] sm:$0xff] %v1271_v18  ;;  %v1273_v27 = vadd.f32 %v1178_v25, %v301_v15  ;;  %v1275_v28 = vadd.f32 %v1264_v26, %v303_v16  ;;  %v1180_v29 = vpop.f32.mrb[3].mxu0  ;;  %v1266_v30 = vpop.f32.mrb[3].mxu1 }
 0x197   : > { %1278 = vst [vmem:[#allocation2 + $0x8] sm:$0xff] %v1270_v23  ;;  %1281 = vst.msk [vmem:[#allocation2 + $0x18] sm:$0xff] %vm1280_vm1, %v1272_v24  ;;  %v1274_v31 = vadd.f32 %v1180_v29, %v302_v21  ;;  %v1276_v32 = vadd.f32 %v1266_v30, %v304_v22 }
 0x198   : > { %1282 = vst [vmem:[#allocation2 + $0x20] sm:$0xff] %v1273_v27  ;;  %1284 = vst [vmem:[#allocation2 + $0x30] sm:$0xff] %v1275_v28 }
 0x199   : > { %1283 = vst [vmem:[#allocation2 + $0x28] sm:$0xff] %v1274_v31  ;;  %1285 = vst.msk [vmem:[#allocation2 + $0x38] sm:$0xff] %vm1280_vm1, %v1276_v32 }
 0x19d   : > { %v1290_v36 = vld [vmem:[#allocation2] sm:$0xff]  ;;  %v1292_v42 = vld [vmem:[#allocation2 + $0x10] sm:$0xff] }
 0x19e   : > { %v1291_v38 = vld [vmem:[#allocation2 + $0x8] sm:$0xff]  ;;  %v1293_v43 = vld [vmem:[#allocation2 + $0x18] sm:$0xff]  ;;  %v1320_v52 = vadd.f32 %v1303_v45, %v1290_v36  ;;  %v1322_v54 = vadd.f32 %v1311_v47, %v1292_v42 }
 0x19f   : > { %v1294_v44 = vld [vmem:[#allocation2 + $0x20] sm:$0xff]  ;;  %v1296_v50 = vld [vmem:[#allocation2 + $0x30] sm:$0xff]  ;;  %v1321_v53 = vadd.f32 %v1307_v46, %v1291_v38  ;;  %v1323_v55 = vadd.f32 %v1315_v48, %v1293_v43 }
 0x1a0   : > { %v1295_v49 = vld [vmem:[#allocation2 + $0x28] sm:$0xff]  ;;  %v1297_v51 = vld [vmem:[#allocation2 + $0x38] sm:$0xff]  ;;  %v1324_v56 = vadd.f32 %v1303_v45, %v1294_v44  ;;  %v1326_v58 = vadd.f32 %v1311_v47, %v1296_v50  ;;  %1328 = vst [vmem:[%s2184_s19] sm:$0xff] %v1320_v52  ;;  %1330 = vst [vmem:[%s2184_s19 + $0x10] sm:$0xff] %v1322_v54 }
 0x1a1   : > { %v1325_v57 = vadd.f32 %v1307_v46, %v1295_v49  ;;  %v1327_v59 = vadd.f32 %v1315_v48, %v1297_v51  ;;  %1329 = vst [vmem:[%s2184_s19 + $0x8] sm:$0xff] %v1321_v53  ;;  %1331 = vst.msk [vmem:[%s2184_s19 + $0x18] sm:$0xff] %vm1280_vm1, %v1323_v55 }
 0x1a2   : > { %1332 = vst [vmem:[%s2184_s19 + $0x20] sm:$0xff] %v1324_v56  ;;  %1334 = vst [vmem:[%s2184_s19 + $0x30] sm:$0xff] %v1326_v58 }
 0x1a3   : > { %1333 = vst [vmem:[%s2184_s19 + $0x28] sm:$0xff] %v1325_v57  ;;  %1335 = vst.msk [vmem:[%s2184_s19 + $0x38] sm:$0xff] %vm1280_vm1, %v1327_v59 }
 0x1a4 PF: > { %s1631_s0 = sshll.u32 %s2026_s18, 10  ;;  %s1353_s25 = sshll.u32 %s2184_s19, 4  ;;  %s2340_s25 = int_to_ptr.vmem [resolvable:$true] %s1353_s25 }
 0x1a5   : > { %s2337_s24 = scalar_lea.hbm %s2405_s3, %s1631_s0  ;;  %s2420_s9 = sand.u32 1, %s2006_s13  }
 0x1a6   : > { %s2344_s10 = scalar_lea.sflag [#allocation5], %s2420_s9  ;;  %s1928_s11 = scalar_lea.vmem %s2340_s25, 1024 }
 0x1a7   : > { %p1929_p8 = scmp.ne.s32.totalorder %s2340_s25, %s1928_s11  ;;  %s2041_s18 = smov [#allocation4]  }
 0x1a8   : > { %s1932_s22 = sshll.u32 %s2041_s18, 4  ;;  %s1933_s22 = int_to_ptr.vmem [resolvable:$false] %s1932_s22 }
 0x1a9   : > { %p1930_p9 = pnand %p1929_p8, %p2136_p7  ;;  %s1934_s23 = scalar_lea.vmem %s1933_s22, 2048 }
 0x1aa   : > { %p1935_p11 = scmp.lt.s32.totalorder %s2340_s25, %s1933_s22  ;;  %p1936_p13 = scmp.lt.s32.totalorder %s1934_s23, %s1928_s11 }
 0x1ab   : > { %p1931_p10 = pneg %p1930_p9 }
 0x1ac   : > { %p1937_p0 = por %p1936_p13, %p1935_p11 }
 0x1ae   : > { %p1938_p1 = pnand %p1937_p0, %p1931_p10 }
 0x1b0   : > { %1941 = shalt.err (!%p1938_p1)
}
 0x1b1   : > { %s1942_s19 = scalar_lea.hbm %s2337_s24, 1024  ;;  %s1946_s29 = scalar_lea.hbm %s2405_s3, 2048 }
 0x1b2   : > { %p1943_p2 = scmp.ne.s32.totalorder %s2337_s24, %s1942_s19  ;;  %p1947_p5 = scmp.lt.u32.totalorder %s2337_s24, %s2405_s3 }
 0x1b3   : > { %p1948_p6 = scmp.lt.u32.totalorder %s1946_s29, %s1942_s19  ;;  %p1950_p9 = scmp.lt.u32.totalorder %s1942_s19, %s2337_s24 }
 0x1b4   : > { %p1944_p3 = pnand %p1943_p2, %p2136_p7 }
 0x1b5   : > { %p1949_p8 = por %p1948_p6, %p1947_p5 }
 0x1b6   : > { %p1945_p4 = pneg %p1944_p3 }
 0x1b7   : > { %p1951_p10 = por %p1950_p9, %p1949_p8 }
 0x1b9   : > { %p1952_p11 = pnand %p1951_p10, %p1945_p4 }
 0x1bb   : > { %1955 = shalt.err (!%p1952_p11)
}
 0x1bc   : > { %s2042_s15 = smov 512   ;;  %s2043_s28 = smov 32  }
 0x1bd   : > { %1640 = dma.vmem_to_hbm [thread:$0]  (%p2136_p7), %s2340_s25, 1024, %s2337_s24, %s2344_s10, %s2042_s15, %s2042_s15, %s2043_s28  }
 0x1be PF: > { %p1646_p13 = scmp.ge.s32.totalorder %s2038_s21, 2  ;;  %s1368_s0 = sand.u32 1, %s2002_s12  }
 0x1bf   : > { %s1369_s17 = scalar_lea.sflag [#allocation5], %s1368_s0 }
 0x1c0   : > { %p1643_p0 = pnand %p1646_p13, %p2144_p12 }
 0x1c2   : > { %1997 = dma.done.wait (!%p1643_p0), %s1369_s17, 1024  }
 0x1c3   : > { %1999 = vsyncadd (!%p1643_p0), %s1369_s17, 4294966272  ;;  %s16_s21 = sadd.s32 1, %s2038_s21   ;;  %s2421_s17 = sld [smem:[#allocation7_spill]] }
 0x1c4   : > { %p13_p1 = scmp.ge.s32.totalorder %s16_s21, 6   ;;  %s2422_s18 = sld [smem:[#allocation8_spill]] }
 0x1c5   : > { %s2423_s19 = sld [smem:[#allocation9_spill]]  ;;  %s2424_s20 = sld [smem:[#allocation10_spill]] }
 0x1c6   : > { %s2425_s12 = smov %s2006_s13  ;;  %s2426_s13 = smov %s2010_s14 }
 0x1c7   : > { %s2427_s14 = smov %s2149_s7  ;;  %s2428_s15 = smov %s2018_s16 }
 0x1c8   : > { %s2429_s16 = smov %s2152_s8  ;;  %15 = sbr.rel (!%p13_p1) target bundleno = 8 (0x8), region = 109 }
 0x1cf   :  { %1374 = vsyncpa [#allocation5], 1 }
 0x1d0   :  { %1376 = vsyncpa [#allocation5 + $0x1], 1 }

</bundles_post_ra>
